<compile_context>
chip_gen: v5e
topology: v5e:2x2
jax: 0.10.0
libtpu: 0.0.40
codegen_flags: <defaults>
</compile_context>

<pallas_src>
import jax
import jax.numpy as jnp
from jax.experimental import pallas as pl
from jax.experimental.pallas import tpu as pltpu

LANE = 128


def _round_up(x, m):
    return (x + m - 1) // m * m


def _make_mlp_kernel(num_extra_hidden):
    """Kernel refs: (x, w1, b1, [w_k, b_k]*, w_out, b_out, out)."""

    def kernel(x_ref, *refs):
        out_ref = refs[-1]
        p = refs[:-1]

        # Layer 1: fused (user|item) input, bf16 MXU operands, f32 accumulate.
        acc = jnp.dot(x_ref[...], p[0][...],
                      preferred_element_type=jnp.float32) + p[1][...]
        h = jnp.maximum(acc, 0.0).astype(jnp.bfloat16)

        # Remaining hidden Linear+ReLU layers (static unroll), bf16 carried.
        idx = 2
        for _ in range(num_extra_hidden):
            w = p[idx][...]           # bf16 (128k, 128k)
            b = p[idx + 1][...]       # f32  (1, 128k)
            idx += 2
            acc = jnp.dot(h, w, preferred_element_type=jnp.float32) + b
            h = jnp.maximum(acc, 0.0).astype(jnp.bfloat16)

        # Output projection -> lane-dense (1, tb) logits.
        # w_out is (8, Wlast) bf16 with only row 0 nonzero (keeps M=8 native
        # sublanes on the MXU); contract over the last dims (trans-B dot).
        w_out = p[idx][...]
        b_out = p[idx + 1][...]       # f32 (1, 1)
        logits = jax.lax.dot_general(
            w_out, h, dimension_numbers=(((1,), (1,)), ((), ())),
            preferred_element_type=jnp.float32)      # (8, tb)
        out_ref[...] = logits[0:1, :] + b_out        # (1, tb), unmasked store

    return kernel


def mlp_forward_pallas(x, first_layer, hidden_layers, out_layer, *,
                       tile_batch=4096):
    """x: (B, 2*emb_dim) bf16 fused latents; params as built by MLPPallas."""
    B, in_dim = x.shape

    # Batch tile: multiple of 128 lanes (required by the lane-dense output
    # blocks).  Prefer >= 2 grid steps so ("parallel",) can shard the batch
    # across both v7x TensorCores (harmless on v5e/v6e).
    tb = _round_up(min(tile_batch, B), LANE)
    if B > LANE and _round_up(B, tb) == tb:
        tb = max(LANE, _round_up((tb + 1) // 2, LANE))
    Bp = _round_up(B, tb)
    if Bp != B:
        x = jnp.pad(x, ((0, Bp - B), (0, 0)))

    w1, b1 = first_layer
    flat_params = [w1, b1]
    for w, b in hidden_layers:
        flat_params += [w, b]
    w_out, b_out = out_layer
    flat_params += [w_out, b_out]

    in_specs = [pl.BlockSpec((tb, in_dim), lambda b: (b, 0))]   # fused latents
    # Weights / biases: whole-array blocks with constant index_map so they
    # stay VMEM-resident across all grid steps.
    in_specs += [pl.BlockSpec(prm.shape, lambda b: (0, 0)) for prm in flat_params]

    # VMEM budget: double-buffered I/O blocks + resident params + a generous
    # allowance for live f32/bf16 activations.  Clamp to [32 MiB, 64 MiB]
    # (64 MiB = v7x physical VMEM; 32 MiB = default scoped limit).
    max_w = max(prm.shape[-1] for prm in flat_params)
    param_bytes = sum(prm.size * prm.dtype.itemsize for prm in flat_params)
    est = (2 * tb * in_dim * x.dtype.itemsize      # input blocks (x2 buffers)
           + 2 * tb * 4                            # output blocks (x2 buffers)
           + 2 * param_bytes                       # resident params
           + 6 * tb * max_w * 4)                   # live activations / temps
    vmem_limit = int(min(max(est, 32 * 1024 * 1024), 64 * 1024 * 1024))

    kernel = _make_mlp_kernel(len(hidden_layers))

    out = pl.pallas_call(
        kernel,
        out_shape=jax.ShapeDtypeStruct((1, Bp), jnp.float32),
        grid=(Bp // tb,),
        in_specs=in_specs,
        out_specs=pl.BlockSpec((1, tb), lambda b: (0, b)),
        compiler_params=pltpu.CompilerParams(
            dimension_semantics=("parallel",),
            vmem_limit_bytes=vmem_limit,
        ),
    )(x, *flat_params)

    # (1, Bp) row -> (B, 1) column of logits (padded rows sliced off).
    return out.reshape(Bp, 1)[:B]


class MLPPallas:
    """JAX/Pallas port of the PyTorch NCF MLP module."""

    def __init__(self, num_users, num_items, layers, key, lane_pad=LANE):
        assert layers[0] % 2 == 0
        emb_dim = layers[0] // 2
        hidden = list(layers[1:])
        assert len(hidden) >= 1

        keys = jax.random.split(key, 2 + 2 * len(hidden) + 2)
        k = 0

        # Embedding tables, kaiming-normal style, stored bf16 (MXU-native LHS,
        # half the gather/DMA traffic).
        self.user_emb = (jax.random.normal(keys[k], (num_users, emb_dim), jnp.float32)
                         * jnp.sqrt(2.0 / emb_dim)).astype(jnp.bfloat16); k += 1
        self.item_emb = (jax.random.normal(keys[k], (num_items, emb_dim), jnp.float32)
                         * jnp.sqrt(2.0 / emb_dim)).astype(jnp.bfloat16); k += 1

        padded = [_round_up(w, lane_pad) for w in hidden]

        # First hidden layer: single (2*emb_dim, h1p) weight (the concat is
        # fused in the wrapper), output width zero-padded to 128 lanes.
        in_dim = layers[0]
        w1 = jax.random.normal(keys[k], (in_dim, hidden[0]), jnp.float32) * jnp.sqrt(1.0 / in_dim)
        b1 = jax.random.normal(keys[k + 1], (hidden[0],), jnp.float32) * 0.01
        k += 2
        w1p = jnp.zeros((in_dim, padded[0]), jnp.float32).at[:, :hidden[0]].set(w1)
        b1p = jnp.zeros((1, padded[0]), jnp.float32).at[:, :hidden[0]].set(b1)
        self.first_layer = (w1p.astype(jnp.bfloat16), b1p)

        # Remaining hidden layers: zero-padded (in_p, out_p) bf16 weights,
        # f32 (1, out_p) biases.
        self.hidden_layers = []
        for li in range(1, len(hidden)):
            din, dout = hidden[li - 1], hidden[li]
            dinp, doutp = padded[li - 1], padded[li]
            w = jax.random.normal(keys[k], (din, dout), jnp.float32) * jnp.sqrt(1.0 / din)
            b = jax.random.normal(keys[k + 1], (dout,), jnp.float32) * 0.01
            k += 2
            wp = jnp.zeros((dinp, doutp), jnp.float32).at[:din, :dout].set(w)
            bp = jnp.zeros((1, doutp), jnp.float32).at[:, :dout].set(b)
            self.hidden_layers.append((wp.astype(jnp.bfloat16), bp))

        # Output layer: (8, Wlast_p) bf16 with only row 0 used (native M=8 for
        # the final trans-B MXU dot); bias (1, 1) f32.
        dlast, dlastp = hidden[-1], padded[-1]
        w_out = jax.random.normal(keys[k], (dlast,), jnp.float32) * jnp.sqrt(1.0 / dlast)
        k += 1
        w_outp = jnp.zeros((8, dlastp), jnp.float32).at[0, :dlast].set(w_out)
        b_out = jax.random.normal(keys[k], (1, 1), jnp.float32) * 0.01
        self.out_layer = (w_outp.astype(jnp.bfloat16), b_out)

    def _latents(self, user_indices, item_indices):
        # Embedding lookup (data-dependent row gather) + concat = glue, plain JAX.
        u = jnp.take(self.user_emb, user_indices, axis=0)
        it = jnp.take(self.item_emb, item_indices, axis=0)
        return jnp.concatenate([u, it], axis=1)      # (B, 2*emb_dim) bf16

    def __call__(self, user_indices, item_indices, *, tile_batch=4096):
        x = self._latents(user_indices, item_indices)
        return mlp_forward_pallas(x, self.first_layer, self.hidden_layers,
                                  self.out_layer, tile_batch=tile_batch)

    def reference(self, user_indices, item_indices):
        """Pure-JAX reference mirroring the kernel's bf16-dot / f32-acc math."""
        x = self._latents(user_indices, item_indices)
        w1, b1 = self.first_layer
        h = jnp.maximum(jnp.dot(x, w1, preferred_element_type=jnp.float32) + b1,
                        0.0).astype(jnp.bfloat16)
        for w, b in self.hidden_layers:
            h = jnp.maximum(jnp.dot(h, w, preferred_element_type=jnp.float32) + b,
                            0.0).astype(jnp.bfloat16)
        w_out, b_out = self.out_layer
        logits = jax.lax.dot_general(
            w_out, h, dimension_numbers=(((1,), (1,)), ((), ())),
            preferred_element_type=jnp.float32)
        return (logits[0:1, :] + b_out).reshape(-1, 1)


if __name__ == "__main__":
    key = jax.random.PRNGKey(0)
    k_model, k_u, k_i = jax.random.split(key, 3)

    num_users = 32
    num_items = 48
    layers = [32, 64, 32, 16]   # layers[0]=32 -> 16-dim user/item embeddings
    batch = 300                 # -> 2 grid steps of 256-row tiles + padding

    model = MLPPallas(num_users, num_items, layers, k_model)

    user_indices = jax.random.randint(k_u, (batch,), 0, num_users, dtype=jnp.int32)
    item_indices = jax.random.randint(k_i, (batch,), 0, num_items, dtype=jnp.int32)

    pred = model(user_indices, item_indices)
    pred = jax.block_until_ready(pred)

    ref = model.reference(user_indices, item_indices)
    assert pred.shape == (batch, 1), pred.shape
    assert jnp.allclose(pred, ref, atol=1e-2, rtol=1e-2), (
        float(jnp.max(jnp.abs(pred - ref))))

    print("KERNEL_OK")
</pallas_src>

<mosaic_0001>
module attributes {stable_mosaic.version = 11 : i64} {
  func.func @kernel(%arg0: i32, %arg1: memref<256x32xbf16, #tpu.memory_space<vmem>>, %arg2: memref<32x128xbf16, #tpu.memory_space<vmem>>, %arg3: memref<1x128xf32, #tpu.memory_space<vmem>>, %arg4: memref<128x128xbf16, #tpu.memory_space<vmem>>, %arg5: memref<1x128xf32, #tpu.memory_space<vmem>>, %arg6: memref<128x128xbf16, #tpu.memory_space<vmem>>, %arg7: memref<1x128xf32, #tpu.memory_space<vmem>>, %arg8: memref<8x128xbf16, #tpu.memory_space<vmem>>, %arg9: memref<1x1xf32, #tpu.memory_space<vmem>>, %arg10: memref<1x256xf32, #tpu.memory_space<vmem>>) attributes {dimension_semantics = [#tpu.dimension_semantics<parallel>], iteration_bounds = array<i64: 2>, scalar_prefetch = 0 : i64, scratch_operands = 0 : i64, tpu.core_type = #tpu.core_type<tc>, window_params = [{transform_indices = @transform_0, window_bounds = array<i64: 256, 32>}, {pipeline_mode = #tpu.pipeline_mode<synchronous>, transform_indices = @transform_1, window_bounds = array<i64: 32, 128>}, {pipeline_mode = #tpu.pipeline_mode<synchronous>, transform_indices = @transform_2, window_bounds = array<i64: 1, 128>}, {pipeline_mode = #tpu.pipeline_mode<synchronous>, transform_indices = @transform_3, window_bounds = array<i64: 128, 128>}, {pipeline_mode = #tpu.pipeline_mode<synchronous>, transform_indices = @transform_4, window_bounds = array<i64: 1, 128>}, {pipeline_mode = #tpu.pipeline_mode<synchronous>, transform_indices = @transform_5, window_bounds = array<i64: 128, 128>}, {pipeline_mode = #tpu.pipeline_mode<synchronous>, transform_indices = @transform_6, window_bounds = array<i64: 1, 128>}, {pipeline_mode = #tpu.pipeline_mode<synchronous>, transform_indices = @transform_7, window_bounds = array<i64: 8, 128>}, {pipeline_mode = #tpu.pipeline_mode<synchronous>, transform_indices = @transform_8, window_bounds = array<i64: 1, 1>}, {transform_indices = @transform_9, window_bounds = array<i64: 1, 256>}]} {
    %c0 = arith.constant 0 : index
    %c0_0 = arith.constant 0 : index
    %0 = vector.load %arg1[%c0, %c0_0] : memref<256x32xbf16, #tpu.memory_space<vmem>>, vector<256x32xbf16>
    %c0_1 = arith.constant 0 : index
    %c0_2 = arith.constant 0 : index
    %1 = vector.load %arg2[%c0_1, %c0_2] : memref<32x128xbf16, #tpu.memory_space<vmem>>, vector<32x128xbf16>
    %cst = arith.constant dense<0.000000e+00> : vector<256x128xf32>
    %2 = tpu.matmul %0, %1, %cst {dimension_numbers = #tpu.dot_dimension_numbers<[1], [0], [0], [1], [0, 0, 1, 1], [], []>} : vector<256x32xbf16>, vector<32x128xbf16>, vector<256x128xf32> -> vector<256x128xf32>
    %c0_3 = arith.constant 0 : index
    %c0_4 = arith.constant 0 : index
    %3 = vector.load %arg3[%c0_3, %c0_4] : memref<1x128xf32, #tpu.memory_space<vmem>>, vector<1x128xf32>
    %4 = vector.broadcast %3 : vector<1x128xf32> to vector<256x128xf32>
    %5 = arith.addf %2, %4 : vector<256x128xf32>
    %cst_5 = arith.constant 0.000000e+00 : f32
    %6 = vector.broadcast %cst_5 : f32 to vector<256x128xf32>
    %7 = arith.maximumf %5, %6 : vector<256x128xf32>
    %8 = arith.truncf %7 : vector<256x128xf32> to vector<256x128xbf16>
    %c0_6 = arith.constant 0 : index
    %c0_7 = arith.constant 0 : index
    %9 = vector.load %arg4[%c0_6, %c0_7] : memref<128x128xbf16, #tpu.memory_space<vmem>>, vector<128x128xbf16>
    %c0_8 = arith.constant 0 : index
    %c0_9 = arith.constant 0 : index
    %10 = vector.load %arg5[%c0_8, %c0_9] : memref<1x128xf32, #tpu.memory_space<vmem>>, vector<1x128xf32>
    %cst_10 = arith.constant dense<0.000000e+00> : vector<256x128xf32>
    %11 = tpu.matmul %8, %9, %cst_10 {dimension_numbers = #tpu.dot_dimension_numbers<[1], [0], [0], [1], [0, 0, 1, 1], [], []>} : vector<256x128xbf16>, vector<128x128xbf16>, vector<256x128xf32> -> vector<256x128xf32>
    %12 = vector.broadcast %10 : vector<1x128xf32> to vector<256x128xf32>
    %13 = arith.addf %11, %12 : vector<256x128xf32>
    %cst_11 = arith.constant 0.000000e+00 : f32
    %14 = vector.broadcast %cst_11 : f32 to vector<256x128xf32>
    %15 = arith.maximumf %13, %14 : vector<256x128xf32>
    %16 = arith.truncf %15 : vector<256x128xf32> to vector<256x128xbf16>
    %c0_12 = arith.constant 0 : index
    %c0_13 = arith.constant 0 : index
    %17 = vector.load %arg6[%c0_12, %c0_13] : memref<128x128xbf16, #tpu.memory_space<vmem>>, vector<128x128xbf16>
    %c0_14 = arith.constant 0 : index
    %c0_15 = arith.constant 0 : index
    %18 = vector.load %arg7[%c0_14, %c0_15] : memref<1x128xf32, #tpu.memory_space<vmem>>, vector<1x128xf32>
    %cst_16 = arith.constant dense<0.000000e+00> : vector<256x128xf32>
    %19 = tpu.matmul %16, %17, %cst_16 {dimension_numbers = #tpu.dot_dimension_numbers<[1], [0], [0], [1], [0, 0, 1, 1], [], []>} : vector<256x128xbf16>, vector<128x128xbf16>, vector<256x128xf32> -> vector<256x128xf32>
    %20 = vector.broadcast %18 : vector<1x128xf32> to vector<256x128xf32>
    %21 = arith.addf %19, %20 : vector<256x128xf32>
    %cst_17 = arith.constant 0.000000e+00 : f32
    %22 = vector.broadcast %cst_17 : f32 to vector<256x128xf32>
    %23 = arith.maximumf %21, %22 : vector<256x128xf32>
    %24 = arith.truncf %23 : vector<256x128xf32> to vector<256x128xbf16>
    %c0_18 = arith.constant 0 : index
    %c0_19 = arith.constant 0 : index
    %25 = vector.load %arg8[%c0_18, %c0_19] : memref<8x128xbf16, #tpu.memory_space<vmem>>, vector<8x128xbf16>
    %c0_20 = arith.constant 0 : index
    %c0_21 = arith.constant 0 : index
    %26 = vector.load %arg9[%c0_20, %c0_21] : memref<1x1xf32, #tpu.memory_space<vmem>>, vector<1x1xf32>
    %cst_22 = arith.constant dense<0.000000e+00> : vector<8x256xf32>
    %27 = tpu.matmul %25, %24, %cst_22 {dimension_numbers = #tpu.dot_dimension_numbers<[1], [1], [0], [0], [0, 0, 1, 0], [], []>} : vector<8x128xbf16>, vector<256x128xbf16>, vector<8x256xf32> -> vector<8x256xf32>
    %28 = vector.extract_strided_slice %27 {offsets = [0, 0], sizes = [1, 256], strides = [1, 1]} : vector<8x256xf32> to vector<1x256xf32>
    %29 = vector.broadcast %26 : vector<1x1xf32> to vector<1x256xf32>
    %30 = arith.addf %28, %29 : vector<1x256xf32>
    %c0_23 = arith.constant 0 : index
    %c0_24 = arith.constant 0 : index
    %31 = vector.load %arg10[%c0_23, %c0_24] : memref<1x256xf32, #tpu.memory_space<vmem>>, vector<1x256xf32>
    tpu.vector_store %arg10[%c0_23, %c0_24], %30 {strides = array<i32>} : memref<1x256xf32, #tpu.memory_space<vmem>>, vector<1x256xf32>,
    return
  }
  func.func @transform_0(%arg0: i32) -> (i32, i32) {
    %c0_i32 = arith.constant 0 : i32
    %c0_i32_0 = arith.constant 0 : i32
    return %arg0, %c0_i32 : i32, i32
  }
  func.func @transform_1(%arg0: i32) -> (i32, i32) {
    %c0_i32 = arith.constant 0 : i32
    %c0_i32_0 = arith.constant 0 : i32
    %c0_i32_1 = arith.constant 0 : i32
    return %c0_i32, %c0_i32_0 : i32, i32
  }
  func.func @transform_2(%arg0: i32) -> (i32, i32) {
    %c0_i32 = arith.constant 0 : i32
    %c0_i32_0 = arith.constant 0 : i32
    %c0_i32_1 = arith.constant 0 : i32
    return %c0_i32, %c0_i32_0 : i32, i32
  }
  func.func @transform_3(%arg0: i32) -> (i32, i32) {
    %c0_i32 = arith.constant 0 : i32
    %c0_i32_0 = arith.constant 0 : i32
    %c0_i32_1 = arith.constant 0 : i32
    return %c0_i32, %c0_i32_0 : i32, i32
  }
  func.func @transform_4(%arg0: i32) -> (i32, i32) {
    %c0_i32 = arith.constant 0 : i32
    %c0_i32_0 = arith.constant 0 : i32
    %c0_i32_1 = arith.constant 0 : i32
    return %c0_i32, %c0_i32_0 : i32, i32
  }
  func.func @transform_5(%arg0: i32) -> (i32, i32) {
    %c0_i32 = arith.constant 0 : i32
    %c0_i32_0 = arith.constant 0 : i32
    %c0_i32_1 = arith.constant 0 : i32
    return %c0_i32, %c0_i32_0 : i32, i32
  }
  func.func @transform_6(%arg0: i32) -> (i32, i32) {
    %c0_i32 = arith.constant 0 : i32
    %c0_i32_0 = arith.constant 0 : i32
    %c0_i32_1 = arith.constant 0 : i32
    return %c0_i32, %c0_i32_0 : i32, i32
  }
  func.func @transform_7(%arg0: i32) -> (i32, i32) {
    %c0_i32 = arith.constant 0 : i32
    %c0_i32_0 = arith.constant 0 : i32
    %c0_i32_1 = arith.constant 0 : i32
    return %c0_i32, %c0_i32_0 : i32, i32
  }
  func.func @transform_8(%arg0: i32) -> (i32, i32) {
    %c0_i32 = arith.constant 0 : i32
    %c0_i32_0 = arith.constant 0 : i32
    %c0_i32_1 = arith.constant 0 : i32
    return %c0_i32, %c0_i32_0 : i32, i32
  }
  func.func @transform_9(%arg0: i32) -> (i32, i32) {
    %c0_i32 = arith.constant 0 : i32
    %c0_i32_0 = arith.constant 0 : i32
    return %c0_i32, %arg0 : i32, i32
  }
}

</mosaic_0001>

<bundles_post_ra>
// kernel: tpu_custom_call.1
= control target key start
LH: loop header
LB: loop body
LE: loop exit
PB: predicated region body
PF: predicated region fallthrough
CT: control target
= control target key end

     0   :  { %s1847_s0 = inlined_call_operand.vmem [shape: bf16[512,32], index: 0, kind: input, shape index: {}]   ;;  %s1848_s1 = inlined_call_operand.vmem [shape: bf16[32,128], index: 1, kind: input, shape index: {}]   ;;  %s1849_s2 = inlined_call_operand.vmem [shape: f32[1,128], index: 2, kind: input, shape index: {}]   ;;  %s1850_s3 = inlined_call_operand.vmem [shape: bf16[128,128], index: 3, kind: input, shape index: {}]   ;;  %s1851_s4 = inlined_call_operand.vmem [shape: f32[1,128], index: 4, kind: input, shape index: {}]   ;;  %s1852_s5 = inlined_call_operand.vmem [shape: bf16[128,128], index: 5, kind: input, shape index: {}]   ;;  %s1853_s6 = inlined_call_operand.vmem [shape: f32[1,128], index: 6, kind: input, shape index: {}]   ;;  %s1854_s7 = inlined_call_operand.vmem [shape: bf16[8,128], index: 7, kind: input, shape index: {}]   ;;  %s1855_s8 = inlined_call_operand.<no memory space> [shape: f32[1,1], index: 8, kind: input, shape index: {}]   ;;  %s1856_s9 = inlined_call_operand.hbm [shape: f32[1,512], index: 9, kind: output, shape index: {}]  }
   0x1   :  { %v14_v0 = vstv %s1855_s8 }
   0x2   :  { %15 = vst [vmem:[#allocation2] sm:$0x1] %v14_v0 }
   0x3   :  { %16 = vsyncpa [#allocation4], 0 }
   0x4   :  { %18 = vsyncpa [#allocation4 + $0x1], 0  ;;  %s1546_s11 = smov 0   ;;  %s1548_s12 = smov 0  }
   0x5   :  { %s1550_s13 = smov 0   ;;  %s1552_s14 = smov 0  }
   0x6 LB: > { %s1567_s8 = sadd.s32 4294967295, %s1490_s14   ;;  %s1187_s15 = sadd.s32 4294967294, %s1490_s14   ;;  %s1490_s14 = sphi %s1552_s14, %s1862_s14   ;;  %s1486_s13 = sphi %s1550_s13, %s1861_s13   ;;  %s1482_s12 = sphi %s1548_s12, %s1860_s12   ;;  %s1478_s11 = sphi %s1546_s11, %s1859_s11  }
   0x7   : > { %s1571_s16 = sadd.s32 1, %s1490_s14   ;;  %s225_s17 = sadd.s32 1, %s1486_s13 }
   0x8   : > { %s222_s18 = ssub.s32 %s1490_s14, %s1571_s16  ;;  %p235_p0 = scmp.ne.s32.totalorder %s1486_s13, %s1482_s12 }
   0x9   : > { %p223_p1 = scmp.eq.s32.totalorder %s222_s18, 0  ;;  %p236_p2 = scmp.eq.s32.totalorder %s1567_s8, 1 }
   0xa   : > { %p241_p3 = scmp.ne.s32.totalorder %s1482_s12, %s1478_s11  ;;  %p242_p4 = scmp.eq.s32.totalorder %s1187_s15, 1 }
   0xb   : > { %s1582_s19 = scalar_select %p223_p1, %s1486_s13, %s225_s17  }
   0xc   : > { %p1584_p5 = por %p236_p2, %p235_p0  ;;  %p1588_p6 = por %p242_p4, %p241_p3 }
   0xd   : > { %p1190_p7 = scmp.ge.s32.totalorder %s1490_s14, 1  ;;  %p293_p8 = scmp.lt.s32.totalorder %s1490_s14, 3 }
   0xf   : > { %p294_p9 = pnand %p1190_p7, %p293_p8 }
  0x10   : > { %s1192_s24 = sshll.u32 (!%p294_p9), %s1567_s8, 5  ;;  %s326_s18 = sand.u32 (!%p294_p9), 1, %s1482_s12  }
  0x11   : > { %297 = sbr.rel (%p294_p9) target bundleno = 899 (0x383), region = 56  ;;  %p330_p10 = scmp.lt.s32.totalorder (!%p294_p9), %s1192_s24, 63 }
  0x12   : > { %s1191_s22 = sshll.u32 (!%p294_p9), %s326_s18, 1  ;;  %s1347_s23 = sshll.u32 (!%p294_p9), %s1567_s8, 1 }
  0x13   : > { %s1123_s26 = scalar_lea.hbm (!%p294_p9), %s1856_s9, %s1347_s23  ;;  %s1113_s8 = scalar_lea.sflag (!%p294_p9), [#allocation4], %s326_s18 }
  0x14   : > { %s1127_s28 = sshll.u32 (!%p294_p9), %s1123_s26, 4  ;;  %s1128_s28 = int_to_ptr.hbm [resolvable:$true] %s1127_s28 }
  0x15   : > { %s1442_s29 = sshra.s32 (!%p294_p9), %s1128_s28, 4  ;;  %s1443_s29 = int_to_ptr.hbm [resolvable:$true] %s1442_s29 }
  0x16   : > { %v1367_v1 = vld [vmem:[%s1848_s1 + $0x8] sm:$0xff]  ;;  %v1366_v2 = vld [vmem:[%s1848_s1] sm:$0xff]  ;;  %s1864_s24 = smov (!%p330_p10, %s1192_s24), 63  ;;  %vm469_vm0 = vcmask 261120   ;;  %v1375_v8 = vld [vmem:[%s1850_s3 + $0x38] sm:$0xff]  ;;  %vm1104_vm1 = vcmask 1040384   ;;  %p1449_p0 = scmp.lt.s32.totalorder %s1443_s29, %s1856_s9 }
  0x17   : > { %524 = vmatpush.bf16.msra.mxu0 %v1367_v1  ;;  %s1193_s27 = sshll.u32 %s1864_s24, 2  ;;  %723 = vmatpush.bf16.msra.mxu1 %v1375_v8  ;;  %v1374_v10 = vld [vmem:[%s1850_s3 + $0x30] sm:$0xff]  ;;  %v1373_v11 = vld [vmem:[%s1850_s3 + $0x28] sm:$0xff]  ;;  %v1372_v12 = vld [vmem:[%s1850_s3 + $0x20] sm:$0xff]  ;;  %s1444_s10 = scalar_lea.hbm %s1443_s29, 2 }
  0x18   : > { %s1604_s30 = scalar_lea.vmem %s1847_s0, %s1193_s27  ;;  %v1371_v13 = vld [vmem:[%s1850_s3 + $0x18] sm:$0xff]  ;;  %v1370_v15 = vld [vmem:[%s1850_s3 + $0x10] sm:$0xff]  ;;  %v1369_v16 = vld [vmem:[%s1850_s3 + $0x8] sm:$0xff]  ;;  %s328_s27 = scalar_lea.vmem [#allocation3], %s1191_s22 }
  0x19   : > { %v1350_v3 = vld [vmem:[%s1604_s30] sm:$0xff]  ;;  %v1351_v4 = vld [vmem:[%s1604_s30 + $0x8] sm:$0xff]  ;;  %v1352_v5 = vld [vmem:[%s1604_s30 + $0x10] sm:$0xff]  ;;  %p1445_p11 = scmp.ne.s32.totalorder %s1443_s29, %s1444_s10  ;;  %s1448_s22 = scalar_lea.hbm %s1856_s9, 4 }
  0x1a   : > { %v1353_v6 = vld [vmem:[%s1604_s30 + $0x18] sm:$0xff]  ;;  %v1354_v7 = vld [vmem:[%s1604_s30 + $0x20] sm:$0xff]  ;;  %v1355_v9 = vld [vmem:[%s1604_s30 + $0x28] sm:$0xff]  ;;  %p1450_p1 = scmp.lt.s32.totalorder %s1448_s22, %s1444_s10 }
  0x1b   : > { %525 = vmatpush.bf16.msra.mxu0 %v1366_v2  ;;  %724 = vmatpush.bf16.msra.mxu1 %v1374_v10  ;;  %v1356_v14 = vld [vmem:[%s1604_s30 + $0x30] sm:$0xff]  ;;  %v1368_v17 = vld [vmem:[%s1850_s3] sm:$0xff]  ;;  %v1357_v18 = vld [vmem:[%s1604_s30 + $0x38] sm:$0xff]  ;;  %p1446_p12 = pnand %p1445_p11, %p1584_p5 }
  0x1c   : > { %v1358_v19 = vld [vmem:[%s1604_s30 + $0x40] sm:$0xff]  ;;  %v1359_v28 = vld [vmem:[%s1604_s30 + $0x48] sm:$0xff]  ;;  %v1360_v36 = vld [vmem:[%s1604_s30 + $0x50] sm:$0xff]  ;;  %p1451_p2 = por %p1450_p1, %p1449_p0 }
  0x1d   : > { %v1650_v21 = vld [vmem:[%s1849_s2] ss:$0 sm:$0xff]  ;;  %v1361_v44 = vld [vmem:[%s1604_s30 + $0x58] sm:$0xff]  ;;  %v1363_v60 = vld [vmem:[%s1604_s30 + $0x68] sm:$0xff]  ;;  %p1447_p13 = pneg %p1446_p12 }
  0x1e   : > { %1266 = vmatmul.msk.bf16.vlgmr.msra.gmra.mxu0 %vm469_vm0, %v1350_v3  ;;  %v1362_v52 = vld [vmem:[%s1604_s30 + $0x60] sm:$0xff]  ;;  %v1383_v1 = vld [vmem:[%s1852_s5 + $0x38] sm:$0xff]  ;;  %v1381_v8 = vld [vmem:[%s1852_s5 + $0x28] sm:$0xff] }
  0x1f   : > { %725 = vmatpush.bf16.msra.mxu1 %v1373_v11  ;;  %928 = vmatpush.bf16.msra.mxu2 %v1383_v1  ;;  %p1452_p3 = pnand %p1451_p2, %p1447_p13 }
  0x23   : > { %726 = vmatpush.bf16.msra.mxu1 %v1372_v12 }
  0x27   : > { %727 = vmatpush.bf16.msra.mxu1 %v1371_v13  ;;  %v1379_v13 = vld [vmem:[%s1852_s5 + $0x18] sm:$0xff] }
  0x2b   : > { %728 = vmatpush.bf16.msra.mxu1 %v1370_v15 }
  0x2e   : > { %1267 = vmatmul.msk.bf16.gmra.mxu0 %vm469_vm0, %v1351_v4 }
  0x2f   : > { %729 = vmatpush.bf16.msra.mxu1 %v1369_v16 }
  0x33   : > { %730 = vmatpush.bf16.msra.mxu1 %v1368_v17  ;;  %v1378_v17 = vld [vmem:[%s1852_s5 + $0x10] sm:$0xff] }
  0x3e   : > { %1268 = vmatmul.msk.bf16.gmra.mxu0 %vm469_vm0, %v1352_v5  ;;  %v1382_v5 = vld [vmem:[%s1852_s5 + $0x30] sm:$0xff] }
  0x3f   : > { %929 = vmatpush.bf16.msra.mxu2 %v1382_v5 }
  0x43   : > { %930 = vmatpush.bf16.msra.mxu2 %v1381_v8 }
  0x4e   : > { %1269 = vmatmul.msk.bf16.gmra.mxu0 %vm469_vm0, %v1353_v6  ;;  %v1364_v6 = vld [vmem:[%s1604_s30 + $0x70] sm:$0xff] }
  0x5e   : > { %1270 = vmatmul.msk.bf16.gmra.mxu0 %vm469_vm0, %v1354_v7 }
  0x6e   : > { %1271 = vmatmul.msk.bf16.gmra.mxu0 %vm469_vm0, %v1355_v9  ;;  %v1380_v9 = vld [vmem:[%s1852_s5 + $0x20] sm:$0xff] }
  0x6f   : > { %931 = vmatpush.bf16.msra.mxu2 %v1380_v9 }
  0x73   : > { %932 = vmatpush.bf16.msra.mxu2 %v1379_v13 }
  0x77   : > { %933 = vmatpush.bf16.msra.mxu2 %v1378_v17 }
  0x7e   : > { %1272 = vmatmul.msk.bf16.gmra.mxu0 %vm469_vm0, %v1356_v14 }
  0x8e   : > { %1273 = vmatmul.msk.bf16.gmra.mxu0 %vm469_vm0, %v1357_v18  ;;  %v1365_v18 = vld [vmem:[%s1604_s30 + $0x78] sm:$0xff]  ;;  %s1125_s30 = sshll.u32 %s328_s27, 4  ;;  %s1126_s30 = int_to_ptr.vmem [resolvable:$true] %s1125_s30 }
  0x9b   : > { %v527_v20 = vpop.f32.mrf.mxu0 }
  0x9c   : > { %v528_v22 = vadd.f32 %v1650_v21, %v527_v20  ;;  %v1377_v20 = vld [vmem:[%s1852_s5 + $0x8] sm:$0xff] }
  0x9d   : > { %934 = vmatpush.bf16.msra.mxu2 %v1377_v20 }
  0x9e   : > { %1274 = vmatmul.msk.bf16.gmra.mxu0 %vm469_vm0, %v1358_v19  ;;  %v607_v25 = vmax.f32 %v528_v22, 0.0  ;;  %v1376_v22 = vld [vmem:[%s1852_s5] sm:$0xff] }
  0xa1   : > { %935 = vmatpush.bf16.msra.mxu2 %v1376_v22 }
  0xa3   : > { %v529_v23 = vpop.f32.mrf.mxu0 }
  0xa4   : > { %v530_v24 = vadd.f32 %v1650_v21, %v529_v23 }
  0xa6   : > { %v608_v26 = vmax.f32 %v530_v24, 0.0 }
  0xa8   : > { %v639_v27 = vpack.c.bf16 %v608_v26, %v607_v25 }
  0xaa   : > { %731 = vmatmul.bf16.vlgmr.msra.gmra.mxu1 %v639_v27 }
  0xab   : > { %v532_v29 = vpop.f32.mrf.mxu0 }
  0xac   : > { %v533_v30 = vadd.f32 %v1650_v21, %v532_v29 }
  0xae   : > { %1275 = vmatmul.msk.bf16.gmra.mxu0 %vm469_vm0, %v1359_v28  ;;  %v609_v33 = vmax.f32 %v533_v30, 0.0 }
  0xb3   : > { %v534_v31 = vpop.f32.mrf.mxu0 }
  0xb4   : > { %v535_v32 = vadd.f32 %v1650_v21, %v534_v31 }
  0xb6   : > { %v610_v34 = vmax.f32 %v535_v32, 0.0 }
  0xb8   : > { %v640_v35 = vpack.c.bf16 %v610_v34, %v609_v33 }
  0xba   : > { %736 = vmatmul.bf16.gmra.mxu1 %v640_v35 }
  0xbb   : > { %v537_v37 = vpop.f32.mrf.mxu0 }
  0xbc   : > { %v538_v38 = vadd.f32 %v1650_v21, %v537_v37  ;;  %v1712_v37 = vld [vmem:[%s1851_s4] ss:$0 sm:$0xff] }
  0xbe   : > { %1276 = vmatmul.msk.bf16.gmra.mxu0 %vm469_vm0, %v1360_v36  ;;  %v611_v41 = vmax.f32 %v538_v38, 0.0 }
  0xc3   : > { %v539_v39 = vpop.f32.mrf.mxu0 }
  0xc4   : > { %v540_v40 = vadd.f32 %v1650_v21, %v539_v39 }
  0xc6   : > { %v612_v42 = vmax.f32 %v540_v40, 0.0 }
  0xc8   : > { %v641_v43 = vpack.c.bf16 %v612_v42, %v611_v41 }
  0xca   : > { %741 = vmatmul.bf16.gmra.mxu1 %v641_v43 }
  0xcb   : > { %v542_v45 = vpop.f32.mrf.mxu0 }
  0xcc   : > { %v543_v46 = vadd.f32 %v1650_v21, %v542_v45 }
  0xce   : > { %1277 = vmatmul.msk.bf16.gmra.mxu0 %vm469_vm0, %v1361_v44  ;;  %v613_v49 = vmax.f32 %v543_v46, 0.0 }
  0xd3   : > { %v544_v47 = vpop.f32.mrf.mxu0 }
  0xd4   : > { %v545_v48 = vadd.f32 %v1650_v21, %v544_v47 }
  0xd6   : > { %v614_v50 = vmax.f32 %v545_v48, 0.0 }
  0xd8   : > { %v642_v51 = vpack.c.bf16 %v614_v50, %v613_v49 }
  0xda   : > { %746 = vmatmul.bf16.gmra.mxu1 %v642_v51 }
  0xdb   : > { %v547_v53 = vpop.f32.mrf.mxu0 }
  0xdc   : > { %v548_v54 = vadd.f32 %v1650_v21, %v547_v53 }
  0xde   : > { %1278 = vmatmul.msk.bf16.gmra.mxu0 %vm469_vm0, %v1362_v52  ;;  %v615_v57 = vmax.f32 %v548_v54, 0.0 }
  0xe3   : > { %v549_v55 = vpop.f32.mrf.mxu0 }
  0xe4   : > { %v550_v56 = vadd.f32 %v1650_v21, %v549_v55 }
  0xe6   : > { %v616_v58 = vmax.f32 %v550_v56, 0.0 }
  0xe8   : > { %v643_v59 = vpack.c.bf16 %v616_v58, %v615_v57 }
  0xea   : > { %751 = vmatmul.bf16.gmra.mxu1 %v643_v59 }
  0xeb   : > { %v552_v61 = vpop.f32.mrf.mxu0 }
  0xec   : > { %v553_v62 = vadd.f32 %v1650_v21, %v552_v61 }
  0xee   : > { %1279 = vmatmul.msk.bf16.gmra.mxu0 %vm469_vm0, %v1363_v60  ;;  %v617_v2 = vmax.f32 %v553_v62, 0.0 }
  0xf3   : > { %v554_v63 = vpop.f32.mrf.mxu0 }
  0xf4   : > { %v555_v0 = vadd.f32 %v1650_v21, %v554_v63 }
  0xf6   : > { %v618_v3 = vmax.f32 %v555_v0, 0.0 }
  0xf8   : > { %v644_v4 = vpack.c.bf16 %v618_v3, %v617_v2 }
  0xfa   : > { %756 = vmatmul.bf16.gmra.mxu1 %v644_v4 }
  0xfb   : > { %v557_v7 = vpop.f32.mrf.mxu0 }
  0xfc   : > { %v558_v10 = vadd.f32 %v1650_v21, %v557_v7 }
  0xfe   : > { %1280 = vmatmul.msk.bf16.gmra.mxu0 %vm469_vm0, %v1364_v6  ;;  %v619_v14 = vmax.f32 %v558_v10, 0.0 }
 0x103   : > { %v559_v11 = vpop.f32.mrf.mxu0 }
 0x104   : > { %v560_v12 = vadd.f32 %v1650_v21, %v559_v11 }
 0x106   : > { %v620_v15 = vmax.f32 %v560_v12, 0.0 }
 0x108   : > { %v645_v16 = vpack.c.bf16 %v620_v15, %v619_v14 }
 0x10a   : > { %761 = vmatmul.bf16.gmra.mxu1 %v645_v16 }
 0x10b   : > { %v562_v19 = vpop.f32.mrf.mxu0 }
 0x10c   : > { %v563_v23 = vadd.f32 %v1650_v21, %v562_v19 }
 0x10e   : > { %1281 = vmatmul.msk.bf16.gmra.mxu0 %vm469_vm0, %v1365_v18  ;;  %v621_v26 = vmax.f32 %v563_v23, 0.0 }
 0x113   : > { %v564_v24 = vpop.f32.mrf.mxu0 }
 0x114   : > { %v565_v25 = vadd.f32 %v1650_v21, %v564_v24 }
 0x116   : > { %v622_v27 = vmax.f32 %v565_v25, 0.0 }
 0x118   : > { %v646_v28 = vpack.c.bf16 %v622_v27, %v621_v26 }
 0x11a   : > { %766 = vmatmul.bf16.gmra.mxu1 %v646_v28 }
 0x11b   : > { %v567_v29 = vpop.f32.mrf.mxu0 }
 0x11c   : > { %v568_v30 = vadd.f32 %v1650_v21, %v567_v29 }
 0x11e   : > { %v623_v33 = vmax.f32 %v568_v30, 0.0 }
 0x123   : > { %v569_v31 = vpop.f32.mrf.mxu0 }
 0x124   : > { %v570_v32 = vadd.f32 %v1650_v21, %v569_v31 }
 0x126   : > { %v624_v34 = vmax.f32 %v570_v32, 0.0 }
 0x127   : > { %v732_v35 = vpop.f32.mrf.mxu1 }
 0x128   : > { %v647_v36 = vpack.c.bf16 %v624_v34, %v623_v33  ;;  %v733_v39 = vadd.f32 %v1712_v37, %v732_v35 }
 0x12a   : > { %771 = vmatmul.bf16.gmra.mxu1 %v647_v36  ;;  %v812_v42 = vmax.f32 %v733_v39, 0.0 }
 0x12b   : > { %v572_v38 = vpop.f32.mrf.mxu0 }
 0x12c   : > { %v573_v43 = vadd.f32 %v1650_v21, %v572_v38 }
 0x12e   : > { %v625_v48 = vmax.f32 %v573_v43, 0.0 }
 0x12f   : > { %v734_v40 = vpop.f32.mrf.mxu1 }
 0x130   : > { %v735_v41 = vadd.f32 %v1712_v37, %v734_v40 }
 0x132   : > { %v813_v44 = vmax.f32 %v735_v41, 0.0 }
 0x133   : > { %v574_v45 = vpop.f32.mrf.mxu0 }
 0x134   : > { %v575_v46 = vadd.f32 %v1650_v21, %v574_v45  ;;  %v844_v47 = vpack.c.bf16 %v813_v44, %v812_v42 }
 0x136   : > { %v626_v49 = vmax.f32 %v575_v46, 0.0  ;;  %936 = vmatmul.bf16.vlgmr.msra.gmra.mxu2 %v844_v47 }
 0x137   : > { %v737_v50 = vpop.f32.mrf.mxu1 }
 0x138   : > { %v648_v51 = vpack.c.bf16 %v626_v49, %v625_v48  ;;  %v738_v53 = vadd.f32 %v1712_v37, %v737_v50 }
 0x13a   : > { %776 = vmatmul.bf16.gmra.mxu1 %v648_v51  ;;  %v814_v56 = vmax.f32 %v738_v53, 0.0 }
 0x13b   : > { %v577_v52 = vpop.f32.mrf.mxu0 }
 0x13c   : > { %v578_v57 = vadd.f32 %v1650_v21, %v577_v52 }
 0x13e   : > { %v627_v62 = vmax.f32 %v578_v57, 0.0 }
 0x13f   : > { %v739_v54 = vpop.f32.mrf.mxu1 }
 0x140   : > { %v740_v55 = vadd.f32 %v1712_v37, %v739_v54 }
 0x142   : > { %v815_v58 = vmax.f32 %v740_v55, 0.0 }
 0x143   : > { %v579_v59 = vpop.f32.mrf.mxu0 }
 0x144   : > { %v580_v60 = vadd.f32 %v1650_v21, %v579_v59  ;;  %v845_v61 = vpack.c.bf16 %v815_v58, %v814_v56 }
 0x146   : > { %v628_v63 = vmax.f32 %v580_v60, 0.0  ;;  %941 = vmatmul.bf16.gmra.mxu2 %v845_v61 }
 0x147   : > { %v742_v0 = vpop.f32.mrf.mxu1 }
 0x148   : > { %v649_v1 = vpack.c.bf16 %v628_v63, %v627_v62  ;;  %v743_v3 = vadd.f32 %v1712_v37, %v742_v0 }
 0x14a   : > { %781 = vmatmul.bf16.gmra.mxu1 %v649_v1  ;;  %v816_v6 = vmax.f32 %v743_v3, 0.0 }
 0x14b   : > { %v582_v2 = vpop.f32.mrf.mxu0 }
 0x14c   : > { %v583_v7 = vadd.f32 %v1650_v21, %v582_v2 }
 0x14e   : > { %v629_v12 = vmax.f32 %v583_v7, 0.0 }
 0x14f   : > { %v744_v4 = vpop.f32.mrf.mxu1 }
 0x150   : > { %v745_v5 = vadd.f32 %v1712_v37, %v744_v4 }
 0x152   : > { %v817_v8 = vmax.f32 %v745_v5, 0.0 }
 0x153   : > { %v584_v9 = vpop.f32.mrf.mxu0 }
 0x154   : > { %v585_v10 = vadd.f32 %v1650_v21, %v584_v9  ;;  %v846_v11 = vpack.c.bf16 %v817_v8, %v816_v6 }
 0x156   : > { %v630_v13 = vmax.f32 %v585_v10, 0.0  ;;  %946 = vmatmul.bf16.gmra.mxu2 %v846_v11 }
 0x157   : > { %v747_v14 = vpop.f32.mrf.mxu1 }
 0x158   : > { %v650_v15 = vpack.c.bf16 %v630_v13, %v629_v12  ;;  %v748_v17 = vadd.f32 %v1712_v37, %v747_v14 }
 0x15a   : > { %786 = vmatmul.bf16.gmra.mxu1 %v650_v15  ;;  %v818_v20 = vmax.f32 %v748_v17, 0.0 }
 0x15b   : > { %v587_v16 = vpop.f32.mrf.mxu0 }
 0x15c   : > { %v588_v22 = vadd.f32 %v1650_v21, %v587_v16 }
 0x15e   : > { %v631_v27 = vmax.f32 %v588_v22, 0.0 }
 0x15f   : > { %v749_v18 = vpop.f32.mrf.mxu1 }
 0x160   : > { %v750_v19 = vadd.f32 %v1712_v37, %v749_v18 }
 0x162   : > { %v819_v23 = vmax.f32 %v750_v19, 0.0 }
 0x163   : > { %v589_v24 = vpop.f32.mrf.mxu0 }
 0x164   : > { %v590_v25 = vadd.f32 %v1650_v21, %v589_v24  ;;  %v847_v26 = vpack.c.bf16 %v819_v23, %v818_v20 }
 0x166   : > { %v632_v28 = vmax.f32 %v590_v25, 0.0  ;;  %951 = vmatmul.bf16.gmra.mxu2 %v847_v26  ;;  %v1749_v25 = vld [vmem:[%s1853_s6] ss:$0 sm:$0xff] }
 0x167   : > { %v752_v29 = vpop.f32.mrf.mxu1 }
 0x168   : > { %v651_v30 = vpack.c.bf16 %v632_v28, %v631_v27  ;;  %v753_v32 = vadd.f32 %v1712_v37, %v752_v29 }
 0x16a   : > { %791 = vmatmul.bf16.gmra.mxu1 %v651_v30  ;;  %v820_v35 = vmax.f32 %v753_v32, 0.0 }
 0x16b   : > { %v592_v31 = vpop.f32.mrf.mxu0 }
 0x16c   : > { %v593_v36 = vadd.f32 %v1650_v21, %v592_v31 }
 0x16e   : > { %v633_v42 = vmax.f32 %v593_v36, 0.0 }
 0x16f   : > { %v754_v33 = vpop.f32.mrf.mxu1 }
 0x170   : > { %v755_v34 = vadd.f32 %v1712_v37, %v754_v33 }
 0x172   : > { %v821_v38 = vmax.f32 %v755_v34, 0.0 }
 0x173   : > { %v594_v39 = vpop.f32.mrf.mxu0 }
 0x174   : > { %v595_v40 = vadd.f32 %v1650_v21, %v594_v39  ;;  %v848_v41 = vpack.c.bf16 %v821_v38, %v820_v35 }
 0x176   : > { %v634_v43 = vmax.f32 %v595_v40, 0.0  ;;  %956 = vmatmul.bf16.gmra.mxu2 %v848_v41 }
 0x177   : > { %v757_v44 = vpop.f32.mrf.mxu1 }
 0x178   : > { %v652_v45 = vpack.c.bf16 %v634_v43, %v633_v42  ;;  %v758_v47 = vadd.f32 %v1712_v37, %v757_v44 }
 0x17a   : > { %796 = vmatmul.bf16.gmra.mxu1 %v652_v45  ;;  %v822_v50 = vmax.f32 %v758_v47, 0.0 }
 0x17b   : > { %v597_v46 = vpop.f32.mrf.mxu0 }
 0x17c   : > { %v598_v51 = vadd.f32 %v1650_v21, %v597_v46 }
 0x17e   : > { %v635_v56 = vmax.f32 %v598_v51, 0.0 }
 0x17f   : > { %v759_v48 = vpop.f32.mrf.mxu1 }
 0x180   : > { %v760_v49 = vadd.f32 %v1712_v37, %v759_v48 }
 0x182   : > { %v823_v52 = vmax.f32 %v760_v49, 0.0 }
 0x183   : > { %v599_v53 = vpop.f32.mrf.mxu0 }
 0x184   : > { %v600_v54 = vadd.f32 %v1650_v21, %v599_v53  ;;  %v849_v55 = vpack.c.bf16 %v823_v52, %v822_v50 }
 0x186   : > { %v636_v57 = vmax.f32 %v600_v54, 0.0  ;;  %961 = vmatmul.bf16.gmra.mxu2 %v849_v55 }
 0x187   : > { %v762_v58 = vpop.f32.mrf.mxu1 }
 0x188   : > { %v653_v59 = vpack.c.bf16 %v636_v57, %v635_v56  ;;  %v763_v61 = vadd.f32 %v1712_v37, %v762_v58 }
 0x18a   : > { %801 = vmatmul.bf16.gmra.mxu1 %v653_v59  ;;  %v824_v0 = vmax.f32 %v763_v61, 0.0 }
 0x18b   : > { %v602_v60 = vpop.f32.mrf.mxu0 }
 0x18c   : > { %v603_v1 = vadd.f32 %v1650_v21, %v602_v60 }
 0x18e   : > { %v637_v6 = vmax.f32 %v603_v1, 0.0 }
 0x18f   : > { %v764_v62 = vpop.f32.mrf.mxu1 }
 0x190   : > { %v765_v63 = vadd.f32 %v1712_v37, %v764_v62 }
 0x192   : > { %v825_v2 = vmax.f32 %v765_v63, 0.0 }
 0x193   : > { %v604_v3 = vpop.f32.mrf.mxu0 }
 0x194   : > { %v605_v4 = vadd.f32 %v1650_v21, %v604_v3  ;;  %v850_v5 = vpack.c.bf16 %v825_v2, %v824_v0 }
 0x196   : > { %v638_v7 = vmax.f32 %v605_v4, 0.0  ;;  %966 = vmatmul.bf16.gmra.mxu2 %v850_v5 }
 0x197   : > { %v767_v8 = vpop.f32.mrf.mxu1 }
 0x198   : > { %v654_v9 = vpack.c.bf16 %v638_v7, %v637_v6  ;;  %v768_v10 = vadd.f32 %v1712_v37, %v767_v8 }
 0x19a   : > { %806 = vmatmul.bf16.gmra.mxu1 %v654_v9  ;;  %v826_v13 = vmax.f32 %v768_v10, 0.0 }
 0x19f   : > { %v769_v11 = vpop.f32.mrf.mxu1 }
 0x1a0   : > { %v770_v12 = vadd.f32 %v1712_v37, %v769_v11 }
 0x1a2   : > { %v827_v14 = vmax.f32 %v770_v12, 0.0 }
 0x1a4   : > { %v851_v15 = vpack.c.bf16 %v827_v14, %v826_v13 }
 0x1a6   : > { %971 = vmatmul.bf16.gmra.mxu2 %v851_v15 }
 0x1a7   : > { %v772_v16 = vpop.f32.mrf.mxu1 }
 0x1a8   : > { %v773_v17 = vadd.f32 %v1712_v37, %v772_v16 }
 0x1aa   : > { %v828_v19 = vmax.f32 %v773_v17, 0.0 }
 0x1af   : > { %v774_v21 = vpop.f32.mrf.mxu1 }
 0x1b0   : > { %v775_v18 = vadd.f32 %v1712_v37, %v774_v21 }
 0x1b2   : > { %v829_v20 = vmax.f32 %v775_v18, 0.0 }
 0x1b4   : > { %v852_v22 = vpack.c.bf16 %v829_v20, %v828_v19 }
 0x1b6   : > { %976 = vmatmul.bf16.gmra.mxu2 %v852_v22 }
 0x1b7   : > { %v777_v23 = vpop.f32.mrf.mxu1 }
 0x1b8   : > { %v778_v26 = vadd.f32 %v1712_v37, %v777_v23 }
 0x1b9   : > { %v937_v24 = vpop.f32.mrf.mxu2 }
 0x1ba   : > { %v938_v28 = vadd.f32 %v1749_v25, %v937_v24  ;;  %v830_v31 = vmax.f32 %v778_v26, 0.0 }
 0x1bc   : > { %v1017_v34 = vmax.f32 %v938_v28, 0.0 }
 0x1bf   : > { %v779_v27 = vpop.f32.mrf.mxu1 }
 0x1c0   : > { %v780_v29 = vadd.f32 %v1712_v37, %v779_v27 }
 0x1c1   : > { %v939_v30 = vpop.f32.mrf.mxu2 }
 0x1c2   : > { %v831_v32 = vmax.f32 %v780_v29, 0.0  ;;  %v940_v33 = vadd.f32 %v1749_v25, %v939_v30 }
 0x1c4   : > { %v1018_v35 = vmax.f32 %v940_v33, 0.0  ;;  %v853_v36 = vpack.c.bf16 %v831_v32, %v830_v31 }
 0x1c6   : > { %981 = vmatmul.bf16.gmra.mxu2 %v853_v36  ;;  %v1755_v38 = vpack.c.bf16 %v1018_v35, %v1017_v34 }
 0x1c7   : > { %v782_v39 = vpop.f32.mrf.mxu1 }
 0x1c8   : > { %v783_v41 = vadd.f32 %v1712_v37, %v782_v39 }
 0x1c9   : > { %v942_v40 = vpop.f32.mrf.mxu2 }
 0x1ca   : > { %v943_v43 = vadd.f32 %v1749_v25, %v942_v40  ;;  %v832_v46 = vmax.f32 %v783_v41, 0.0 }
 0x1cc   : > { %v1019_v49 = vmax.f32 %v943_v43, 0.0 }
 0x1cf   : > { %v784_v42 = vpop.f32.mrf.mxu1 }
 0x1d0   : > { %v785_v44 = vadd.f32 %v1712_v37, %v784_v42 }
 0x1d1   : > { %v944_v45 = vpop.f32.mrf.mxu2 }
 0x1d2   : > { %v833_v47 = vmax.f32 %v785_v44, 0.0  ;;  %v945_v48 = vadd.f32 %v1749_v25, %v944_v45 }
 0x1d4   : > { %v1020_v50 = vmax.f32 %v945_v48, 0.0  ;;  %v854_v51 = vpack.c.bf16 %v833_v47, %v832_v46 }
 0x1d6   : > { %986 = vmatmul.bf16.gmra.mxu2 %v854_v51  ;;  %v1761_v52 = vpack.c.bf16 %v1020_v50, %v1019_v49 }
 0x1d7   : > { %v787_v53 = vpop.f32.mrf.mxu1 }
 0x1d8   : > { %v788_v55 = vadd.f32 %v1712_v37, %v787_v53 }
 0x1d9   : > { %v947_v54 = vpop.f32.mrf.mxu2 }
 0x1da   : > { %v948_v57 = vadd.f32 %v1749_v25, %v947_v54  ;;  %v834_v60 = vmax.f32 %v788_v55, 0.0 }
 0x1dc   : > { %v1021_v63 = vmax.f32 %v948_v57, 0.0 }
 0x1df   : > { %v789_v56 = vpop.f32.mrf.mxu1 }
 0x1e0   : > { %v790_v58 = vadd.f32 %v1712_v37, %v789_v56 }
 0x1e1   : > { %v949_v59 = vpop.f32.mrf.mxu2 }
 0x1e2   : > { %v835_v61 = vmax.f32 %v790_v58, 0.0  ;;  %v950_v62 = vadd.f32 %v1749_v25, %v949_v59 }
 0x1e4   : > { %v1022_v0 = vmax.f32 %v950_v62, 0.0  ;;  %v855_v1 = vpack.c.bf16 %v835_v61, %v834_v60 }
 0x1e6   : > { %991 = vmatmul.bf16.gmra.mxu2 %v855_v1  ;;  %v1767_v2 = vpack.c.bf16 %v1022_v0, %v1021_v63 }
 0x1e7   : > { %v792_v3 = vpop.f32.mrf.mxu1 }
 0x1e8   : > { %v793_v5 = vadd.f32 %v1712_v37, %v792_v3 }
 0x1e9   : > { %v952_v4 = vpop.f32.mrf.mxu2 }
 0x1ea   : > { %v953_v7 = vadd.f32 %v1749_v25, %v952_v4  ;;  %v836_v10 = vmax.f32 %v793_v5, 0.0 }
 0x1ec   : > { %v1023_v13 = vmax.f32 %v953_v7, 0.0 }
 0x1ef   : > { %v794_v6 = vpop.f32.mrf.mxu1 }
 0x1f0   : > { %v795_v8 = vadd.f32 %v1712_v37, %v794_v6 }
 0x1f1   : > { %v954_v9 = vpop.f32.mrf.mxu2 }
 0x1f2   : > { %v837_v11 = vmax.f32 %v795_v8, 0.0  ;;  %v955_v12 = vadd.f32 %v1749_v25, %v954_v9 }
 0x1f4   : > { %v856_v14 = vpack.c.bf16 %v837_v11, %v836_v10  ;;  %v1024_v15 = vmax.f32 %v955_v12, 0.0 }
 0x1f6   : > { %996 = vmatmul.bf16.gmra.mxu2 %v856_v14  ;;  %v1773_v16 = vpack.c.bf16 %v1024_v15, %v1023_v13 }
 0x1f7   : > { %v797_v17 = vpop.f32.mrf.mxu1 }
 0x1f8   : > { %v798_v18 = vadd.f32 %v1712_v37, %v797_v17 }
 0x1f9   : > { %v957_v21 = vpop.f32.mrf.mxu2 }
 0x1fa   : > { %v958_v20 = vadd.f32 %v1749_v25, %v957_v21  ;;  %v838_v24 = vmax.f32 %v798_v18, 0.0 }
 0x1fc   : > { %v1025_v28 = vmax.f32 %v958_v20, 0.0 }
 0x1ff   : > { %v799_v19 = vpop.f32.mrf.mxu1 }
 0x200   : > { %v800_v22 = vadd.f32 %v1712_v37, %v799_v19 }
 0x201   : > { %v959_v23 = vpop.f32.mrf.mxu2 }
 0x202   : > { %v839_v26 = vmax.f32 %v800_v22, 0.0  ;;  %v960_v27 = vadd.f32 %v1749_v25, %v959_v23 }
 0x204   : > { %v857_v29 = vpack.c.bf16 %v839_v26, %v838_v24  ;;  %v1026_v30 = vmax.f32 %v960_v27, 0.0 }
 0x206   : > { %1001 = vmatmul.bf16.gmra.mxu2 %v857_v29  ;;  %v1053_v31 = vpack.c.bf16 %v1026_v30, %v1025_v28 }
 0x207   : > { %v802_v32 = vpop.f32.mrf.mxu1 }
 0x208   : > { %v803_v34 = vadd.f32 %v1712_v37, %v802_v32 }
 0x209   : > { %v962_v33 = vpop.f32.mrf.mxu2 }
 0x20a   : > { %v840_v40 = vmax.f32 %v803_v34, 0.0  ;;  %v963_v3 = vadd.f32 %v1749_v25, %v962_v33 }
 0x20c   : > { %v1027_v8 = vmax.f32 %v963_v3, 0.0 }
 0x20f   : > { %v804_v35 = vpop.f32.mrf.mxu1 }
 0x210   : > { %v805_v36 = vadd.f32 %v1712_v37, %v804_v35 }
 0x211   : > { %v964_v39 = vpop.f32.mrf.mxu2 }
 0x212   : > { %v841_v41 = vmax.f32 %v805_v36, 0.0  ;;  %v965_v0 = vadd.f32 %v1749_v25, %v964_v39 }
 0x214   : > { %v858_v42 = vpack.c.bf16 %v841_v41, %v840_v40  ;;  %v1028_v6 = vmax.f32 %v965_v0, 0.0  ;;  %v1492_v0 = vmov 0  }
 0x215   : > { %1424 = vset.pattern.permute.xlu0 %v1492_v0 }
 0x216   : > { %1006 = vmatmul.bf16.gmra.mxu2 %v858_v42  ;;  %v1054_v11 = vpack.c.bf16 %v1028_v6, %v1027_v8 }
 0x217   : > { %v807_v43 = vpop.f32.mrf.mxu1 }
 0x218   : > { %v808_v45 = vadd.f32 %v1712_v37, %v807_v43 }
 0x219   : > { %v967_v44 = vpop.f32.mrf.mxu2 }
 0x21a   : > { %v842_v49 = vmax.f32 %v808_v45, 0.0  ;;  %v968_v61 = vadd.f32 %v1749_v25, %v967_v44 }
 0x21c   : > { %v1029_v63 = vmax.f32 %v968_v61, 0.0 }
 0x21f   : > { %v809_v46 = vpop.f32.mrf.mxu1 }
 0x220   : > { %v810_v47 = vadd.f32 %v1712_v37, %v809_v46 }
 0x221   : > { %v969_v48 = vpop.f32.mrf.mxu2 }
 0x222   : > { %v843_v50 = vmax.f32 %v810_v47, 0.0  ;;  %v970_v59 = vadd.f32 %v1749_v25, %v969_v48 }
 0x224   : > { %v859_v51 = vpack.c.bf16 %v843_v50, %v842_v49  ;;  %v1030_v62 = vmax.f32 %v970_v59, 0.0 }
 0x226   : > { %1011 = vmatmul.bf16.gmra.mxu2 %v859_v51  ;;  %v1055_v1 = vpack.c.bf16 %v1030_v62, %v1029_v63  ;;  %v1066_v63 = vld [vmem:[#allocation2] sm:$0x1] }
 0x227   : > { %1095 = vperm.xlu0 %1424, %v1066_v63  }
 0x229   : > { %v972_v53 = vpop.f32.mrf.mxu2 }
 0x22a   : > { %v973_v54 = vadd.f32 %v1749_v25, %v972_v53 }
 0x22c   : > { %v1031_v57 = vmax.f32 %v973_v54, 0.0 }
 0x231   : > { %v974_v55 = vpop.f32.mrf.mxu2 }
 0x232   : > { %v975_v56 = vadd.f32 %v1749_v25, %v974_v55  ;;  %v1065_v55 = vld [vmem:[%s1854_s7] sm:$0xf] }
 0x234   : > { %v1032_v58 = vmax.f32 %v975_v56, 0.0 }
 0x236   : > { %v1056_v60 = vpack.c.bf16 %v1032_v58, %v1031_v57 }
 0x238   : > { %1067 = vmatpush.bf16.xpose.msra.mxu3 %v1056_v60 }
 0x239   : > { %v977_v37 = vpop.f32.mrf.mxu2 }
 0x23a   : > { %v978_v4 = vadd.f32 %v1749_v25, %v977_v37 }
 0x23c   : > { %v1033_v9 = vmax.f32 %v978_v4, 0.0 }
 0x240   : > { %1068 = vmatpush.bf16.xpose.msra.mxu3 %v1055_v1 }
 0x241   : > { %v979_v5 = vpop.f32.mrf.mxu2 }
 0x242   : > { %v980_v7 = vadd.f32 %v1749_v25, %v979_v5  ;;  %v1107_v5 = vlaneseq }
 0x244   : > { %v1034_v10 = vmax.f32 %v980_v7, 0.0  ;;  %vm1109_vm2 = vcmp.lt.s32.totalorder %v1107_v5, 256 }
 0x246   : > { %v1791_v12 = vpack.c.bf16 %v1034_v10, %v1033_v9 }
 0x248   : > { %1069 = vmatpush.bf16.xpose.msra.mxu3 %v1054_v11 }
 0x249   : > { %v982_v13 = vpop.f32.mrf.mxu2 }
 0x24a   : > { %v983_v14 = vadd.f32 %v1749_v25, %v982_v13 }
 0x24c   : > { %v1035_v21 = vmax.f32 %v983_v14, 0.0 }
 0x250   : > { %1070 = vmatpush.bf16.xpose.msra.mxu3 %v1053_v31 }
 0x251   : > { %v984_v15 = vpop.f32.mrf.mxu2 }
 0x252   : > { %v985_v17 = vadd.f32 %v1749_v25, %v984_v15 }
 0x254   : > { %v1036_v18 = vmax.f32 %v985_v17, 0.0 }
 0x256   : > { %v1058_v19 = vpack.c.bf16 %v1036_v18, %v1035_v21 }
 0x258   : > { %1071 = vmatpush.bf16.xpose.msra.mxu3 %v1773_v16 }
 0x259   : > { %v987_v20 = vpop.f32.mrf.mxu2 }
 0x25a   : > { %v988_v22 = vadd.f32 %v1749_v25, %v987_v20 }
 0x25c   : > { %v1037_v26 = vmax.f32 %v988_v22, 0.0 }
 0x260   : > { %1072 = vmatpush.bf16.xpose.msra.mxu3 %v1767_v2 }
 0x261   : > { %v989_v23 = vpop.f32.mrf.mxu2 }
 0x262   : > { %v990_v24 = vadd.f32 %v1749_v25, %v989_v23 }
 0x264   : > { %v1038_v27 = vmax.f32 %v990_v24, 0.0 }
 0x266   : > { %v1059_v28 = vpack.c.bf16 %v1038_v27, %v1037_v26 }
 0x268   : > { %1073 = vmatpush.bf16.xpose.msra.mxu3 %v1761_v52 }
 0x269   : > { %v992_v29 = vpop.f32.mrf.mxu2 }
 0x26a   : > { %v993_v30 = vadd.f32 %v1749_v25, %v992_v29 }
 0x26c   : > { %v1039_v32 = vmax.f32 %v993_v30, 0.0 }
 0x270   : > { %1074 = vmatpush.bf16.xpose.msra.mxu3 %v1755_v38 }
 0x271   : > { %v994_v31 = vpop.f32.mrf.mxu2 }
 0x272   : > { %v995_v16 = vadd.f32 %v1749_v25, %v994_v31 }
 0x274   : > { %v1040_v33 = vmax.f32 %v995_v16, 0.0 }
 0x276   : > { %v1060_v34 = vpack.c.bf16 %v1040_v33, %v1039_v32 }
 0x277   : > { %1075 = vmatmul.bf16.vlgmr.msra.gmra.mxu3 %v1065_v55 }
 0x279   : > { %v997_v2 = vpop.f32.mrf.mxu2 }
 0x27a   : > { %v998_v35 = vadd.f32 %v1749_v25, %v997_v2 }
 0x27c   : > { %v1041_v40 = vmax.f32 %v998_v35, 0.0 }
 0x281   : > { %v999_v36 = vpop.f32.mrf.mxu2 }
 0x282   : > { %v1000_v39 = vadd.f32 %v1749_v25, %v999_v36 }
 0x284   : > { %v1042_v41 = vmax.f32 %v1000_v39, 0.0 }
 0x286   : > { %v1061_v52 = vpack.c.bf16 %v1042_v41, %v1041_v40 }
 0x289   : > { %v1002_v42 = vpop.f32.mrf.mxu2 }
 0x28a   : > { %v1003_v60 = vadd.f32 %v1749_v25, %v1002_v42 }
 0x28c   : > { %v1043_v37 = vmax.f32 %v1003_v60, 0.0 }
 0x291   : > { %v1004_v43 = vpop.f32.mrf.mxu2 }
 0x292   : > { %v1005_v58 = vadd.f32 %v1749_v25, %v1004_v43 }
 0x294   : > { %v1044_v61 = vmax.f32 %v1005_v58, 0.0 }
 0x296   : > { %v1062_v62 = vpack.c.bf16 %v1044_v61, %v1043_v37 }
 0x299   : > { %v1007_v44 = vpop.f32.mrf.mxu2  ;;  %v1096_v3 = vpop.permute.xlu0 %1095 }
 0x29a   : > { %v1008_v54 = vadd.f32 %v1749_v25, %v1007_v44  ;;  %v1098_v4 = vperm.slane %v1096_v3, 0 }
 0x29c   : > { %v1045_v57 = vmax.f32 %v1008_v54, 0.0 }
 0x2a1   : > { %v1009_v45 = vpop.f32.mrf.mxu2 }
 0x2a2   : > { %v1010_v51 = vadd.f32 %v1749_v25, %v1009_v45 }
 0x2a4   : > { %v1046_v56 = vmax.f32 %v1010_v51, 0.0 }
 0x2a6   : > { %v1063_v59 = vpack.c.bf16 %v1046_v56, %v1045_v57 }
 0x2a9   : > { %v1012_v38 = vpop.f32.mrf.mxu2 }
 0x2aa   : > { %v1013_v46 = vadd.f32 %v1749_v25, %v1012_v38 }
 0x2ac   : > { %v1047_v49 = vmax.f32 %v1013_v46, 0.0 }
 0x2b1   : > { %v1014_v47 = vpop.f32.mrf.mxu2 }
 0x2b2   : > { %v1015_v48 = vadd.f32 %v1749_v25, %v1014_v47 }
 0x2b4   : > { %v1048_v50 = vmax.f32 %v1015_v48, 0.0 }
 0x2b6   : > { %v1064_v53 = vpack.c.bf16 %v1048_v50, %v1047_v49 }
 0x2b8   : > { %1080 = vmatpush.bf16.xpose.msrb.mxu3 %v1064_v53 }
 0x2c0   : > { %1081 = vmatpush.bf16.xpose.msrb.mxu3 %v1063_v59 }
 0x2c8   : > { %1082 = vmatpush.bf16.xpose.msrb.mxu3 %v1062_v62 }
 0x2d0   : > { %1083 = vmatpush.bf16.xpose.msrb.mxu3 %v1061_v52 }
 0x2d8   : > { %1084 = vmatpush.bf16.xpose.msrb.mxu3 %v1060_v34 }
 0x2e0   : > { %1085 = vmatpush.bf16.xpose.msrb.mxu3 %v1059_v28 }
 0x2e8   : > { %1086 = vmatpush.bf16.xpose.msrb.mxu3 %v1058_v19 }
 0x2f0   : > { %1087 = vmatpush.bf16.xpose.msrb.mxu3 %v1791_v12 }
 0x2f7   : > { %1088 = vmatmul.bf16.vlgmr.msrb.gmra.mxu3 %v1065_v55 }
 0x2fa   : > { %v1076_v1 = vpop.f32.mrf.mxu3 }
 0x2fb   : > { %v1099_v8 = vadd.f32 %v1098_v4, %v1076_v1 }
 0x302   : > { %v1078_v25 = vpop.f32.mrf.mxu3 }
 0x37a   : > { %v1089_v6 = vpop.f32.mrf.mxu3 }
 0x37b   : > { %v1100_v7 = vadd.f32 %v1098_v4, %v1089_v6 }
 0x37d   : > { %v1103_v9 = vrot.slane %v1100_v7, 7 }
 0x37f   : > { %v1105_v10 = vsel %vm1104_vm1, %v1099_v8, %v1103_v9 }
 0x380   : > { %1111 = vst.msk [vmem:[%s328_s27] sm:$0x3] %vm1109_vm2, %v1105_v10 }
 0x381   : > { %1455 = shalt.err (!%p1452_p3)
}
 0x382   : > { %1384 = dma.vmem_to_hbm [thread:$0]  (%p1584_p5), %s1126_s30, 32, %s1128_s28, %s1113_s8   ;;  %v1091_v11 = vpop.f32.mrf.mxu3 }
 0x383 PF: > { %p1390_p4 = scmp.ge.s32.totalorder %s1490_s14, 2  ;;  %s1139_s18 = sand.u32 1, %s1478_s11  }
 0x384   : > { %s1140_s25 = scalar_lea.sflag [#allocation4], %s1139_s18 }
 0x385   : > { %p1387_p7 = pnand %p1390_p4, %p1588_p6 }
 0x387   : > { %p1388_p8 = pneg %p1387_p7 }
 0x389   : > { %1473 = dma.done.wait (%p1388_p8), %s1140_s25, 32  }
 0x38a   : > { %1475 = vsyncadd (%p1388_p8), %s1140_s25, 4294967264  ;;  %p21_p9 = scmp.ge.s32.totalorder %s1571_s16, 4   ;;  %s1859_s11 = smov %s1482_s12 }
 0x38b   : > { %s1860_s12 = smov %s1486_s13  ;;  %s1861_s13 = smov %s1582_s19 }
 0x38c   : > { %s1862_s14 = smov %s1571_s16  ;;  %23 = sbr.rel (!%p21_p9) target bundleno = 6 (0x6), region = 91 }
 0x391   :  { %1146 = vsyncpa [#allocation4], 1 }
 0x392   :  { %1148 = vsyncpa [#allocation4 + $0x1], 1 }

</bundles_post_ra>
